<compile_context>
chip_gen: v7x
topology: tpu7x:2x2x1
jax: 0.10.0
libtpu: 0.0.40
codegen_flags: <defaults>
</compile_context>

<pallas_src>
import functools

import jax
import jax.numpy as jnp
from jax.experimental import pallas as pl
from jax.experimental.pallas import tpu as pltpu


def _hflip_kernel(x_ref, o_ref, *, tw, c):
    """x_ref / o_ref: (TH, tw*c) lane-dense blocks of the (H, W*C) view.

    The input BlockSpec already mirrors the W-block index across the grid, so
    this body only reverses the order of the `tw` channel-groups (each `c`
    lanes wide) inside the block and writes it back with one full-width store.
    """
    x = x_ref[...]
    if tw == 1:
        o_ref[...] = x
    else:
        pieces = [x[:, (tw - 1 - g) * c:(tw - g) * c] for g in range(tw)]
        o_ref[...] = jnp.concatenate(pieces, axis=1)


def _choose_h_tile(h, max_rows=512):
    """Row-tile: full H if small, else a multiple-of-8 divisor of H."""
    if h <= max_rows:
        return h
    t = (max_rows // 8) * 8
    while t >= 8:
        if h % t == 0:
            return t
        t -= 8
    return h  # fallback: untiled along H


def _choose_w_tile(w, c, max_lanes=512):
    """W-tile such that the block lane width tw*c is a multiple of 128
    (unmasked, lane-dense stores) or covers the full W*C extent."""
    if w * c <= max_lanes:
        return w
    tw = max_lanes // c
    while tw > 1:
        if w % tw == 0 and (tw * c) % 128 == 0:
            return tw
        tw -= 1
    return w  # fallback: untiled along W (full rows)


def hflip_pallas(img, *, max_rows=512, max_lanes=512):
    """Unconditional horizontal flip (np.flip(img, axis=1)) as a Pallas kernel."""
    H, W, C = img.shape
    th = _choose_h_tile(H, max_rows)
    tw = _choose_w_tile(W, C, max_lanes)
    n_h, n_w = H // th, W // tw
    lanes = tw * C

    x2 = img.reshape(H, W * C)  # free: memory layout unchanged (HWC row-major)
    kernel = functools.partial(_hflip_kernel, tw=tw, c=C)

    out2 = pl.pallas_call(
        kernel,
        out_shape=jax.ShapeDtypeStruct((H, W * C), img.dtype),
        grid=(n_h, n_w),
        # Input index_map mirrors the W block; output is written in order.
        in_specs=[pl.BlockSpec((th, lanes), lambda h, w: (h, n_w - 1 - w))],
        out_specs=pl.BlockSpec((th, lanes), lambda h, w: (h, w)),
        compiler_params=pltpu.CompilerParams(
            dimension_semantics=("parallel", "parallel")),
    )(x2)
    return out2.reshape(H, W, C)


def horizontal_flip_pallas(img, p, key):
    """JAX/Pallas equivalent of horizontal_flip(p).forward(img)."""
    # TODO(synk): the original module uses host-side np.random.rand(); here the
    # draw is a deterministic jax.random draw passed in via `key` (glue code).
    draw = jax.random.uniform(key, (), dtype=jnp.float32)
    do_flip = draw < jnp.float32(p)
    # Skip the kernel entirely on the identity path: saves the full HBM
    # read + write of the image on the (1 - p) fraction of calls.
    out = jax.lax.cond(do_flip, hflip_pallas, lambda x: x, img)
    return out, do_flip


if __name__ == "__main__":
    key = jax.random.PRNGKey(0)
    k_img, k_draw = jax.random.split(key)

    # Small HWC image consistent with the module: H=16, W=16, C=4.
    img = jax.random.normal(k_img, (16, 16, 4), dtype=jnp.float32)
    p = 0.5  # flip probability, as in horizontal_flip(p=0.5)

    # 1) Validate the flip kernel directly (always executes the Pallas kernel).
    flipped = jax.block_until_ready(hflip_pallas(img))
    assert flipped.shape == img.shape and flipped.dtype == img.dtype
    assert jnp.array_equal(flipped, jnp.flip(img, axis=1)), "flip mismatch"

    # 2) Full module semantics: random gate + flip / identity.
    out, did_flip = horizontal_flip_pallas(img, p, k_draw)
    out = jax.block_until_ready(out)
    ref = jnp.where(did_flip, jnp.flip(img, axis=1), img)
    assert out.shape == img.shape and out.dtype == img.dtype
    assert jnp.array_equal(out, ref), "gated flip mismatch"

    print("KERNEL_OK")
</pallas_src>

<mosaic_0001>
module attributes {stable_mosaic.version = 11 : i64} {
  func.func @_hflip_kernel(%arg0: i32, %arg1: i32, %arg2: memref<16x64xf32, #tpu.memory_space<vmem>>, %arg3: memref<16x64xf32, #tpu.memory_space<vmem>>) attributes {dimension_semantics = [#tpu.dimension_semantics<parallel>, #tpu.dimension_semantics<parallel>], iteration_bounds = array<i64: 1, 1>, scalar_prefetch = 0 : i64, scratch_operands = 0 : i64, tpu.core_type = #tpu.core_type<tc>, window_params = [{transform_indices = @transform_0, window_bounds = array<i64: 16, 64>}, {transform_indices = @transform_1, window_bounds = array<i64: 16, 64>}]} {
    %c0 = arith.constant 0 : index
    %c0_0 = arith.constant 0 : index
    %0 = vector.load %arg2[%c0, %c0_0] : memref<16x64xf32, #tpu.memory_space<vmem>>, vector<16x64xf32>
    %1 = vector.extract_strided_slice %0 {offsets = [0, 60], sizes = [16, 4], strides = [1, 1]} : vector<16x64xf32> to vector<16x4xf32>
    %2 = vector.extract_strided_slice %0 {offsets = [0, 56], sizes = [16, 4], strides = [1, 1]} : vector<16x64xf32> to vector<16x4xf32>
    %3 = vector.extract_strided_slice %0 {offsets = [0, 52], sizes = [16, 4], strides = [1, 1]} : vector<16x64xf32> to vector<16x4xf32>
    %4 = vector.extract_strided_slice %0 {offsets = [0, 48], sizes = [16, 4], strides = [1, 1]} : vector<16x64xf32> to vector<16x4xf32>
    %5 = vector.extract_strided_slice %0 {offsets = [0, 44], sizes = [16, 4], strides = [1, 1]} : vector<16x64xf32> to vector<16x4xf32>
    %6 = vector.extract_strided_slice %0 {offsets = [0, 40], sizes = [16, 4], strides = [1, 1]} : vector<16x64xf32> to vector<16x4xf32>
    %7 = vector.extract_strided_slice %0 {offsets = [0, 36], sizes = [16, 4], strides = [1, 1]} : vector<16x64xf32> to vector<16x4xf32>
    %8 = vector.extract_strided_slice %0 {offsets = [0, 32], sizes = [16, 4], strides = [1, 1]} : vector<16x64xf32> to vector<16x4xf32>
    %9 = vector.extract_strided_slice %0 {offsets = [0, 28], sizes = [16, 4], strides = [1, 1]} : vector<16x64xf32> to vector<16x4xf32>
    %10 = vector.extract_strided_slice %0 {offsets = [0, 24], sizes = [16, 4], strides = [1, 1]} : vector<16x64xf32> to vector<16x4xf32>
    %11 = vector.extract_strided_slice %0 {offsets = [0, 20], sizes = [16, 4], strides = [1, 1]} : vector<16x64xf32> to vector<16x4xf32>
    %12 = vector.extract_strided_slice %0 {offsets = [0, 16], sizes = [16, 4], strides = [1, 1]} : vector<16x64xf32> to vector<16x4xf32>
    %13 = vector.extract_strided_slice %0 {offsets = [0, 12], sizes = [16, 4], strides = [1, 1]} : vector<16x64xf32> to vector<16x4xf32>
    %14 = vector.extract_strided_slice %0 {offsets = [0, 8], sizes = [16, 4], strides = [1, 1]} : vector<16x64xf32> to vector<16x4xf32>
    %15 = vector.extract_strided_slice %0 {offsets = [0, 4], sizes = [16, 4], strides = [1, 1]} : vector<16x64xf32> to vector<16x4xf32>
    %16 = vector.extract_strided_slice %0 {offsets = [0, 0], sizes = [16, 4], strides = [1, 1]} : vector<16x64xf32> to vector<16x4xf32>
    %17 = tpu.concatenate %1, %2, %3, %4, %5, %6, %7, %8, %9, %10, %11, %12, %13, %14, %15, %16 in 1 : vector<16x4xf32>, vector<16x4xf32>, vector<16x4xf32>, vector<16x4xf32>, vector<16x4xf32>, vector<16x4xf32>, vector<16x4xf32>, vector<16x4xf32>, vector<16x4xf32>, vector<16x4xf32>, vector<16x4xf32>, vector<16x4xf32>, vector<16x4xf32>, vector<16x4xf32>, vector<16x4xf32>, vector<16x4xf32> -> vector<16x64xf32>
    %c0_1 = arith.constant 0 : index
    %c0_2 = arith.constant 0 : index
    %18 = vector.load %arg3[%c0_1, %c0_2] : memref<16x64xf32, #tpu.memory_space<vmem>>, vector<16x64xf32>
    tpu.vector_store %arg3[%c0_1, %c0_2], %17 {strides = array<i32>} : memref<16x64xf32, #tpu.memory_space<vmem>>, vector<16x64xf32>,
    return
  }
  func.func @transform_0(%arg0: i32, %arg1: i32) -> (i32, i32) {
    %c0_i32 = arith.constant 0 : i32
    %0 = arith.subi %c0_i32, %arg1 : i32
    %c0_i32_0 = arith.constant 0 : i32
    return %arg0, %0 : i32, i32
  }
  func.func @transform_1(%arg0: i32, %arg1: i32) -> (i32, i32) {
    %c0_i32 = arith.constant 0 : i32
    return %arg0, %arg1 : i32, i32
  }
}

</mosaic_0001>

<bundles_post_ra>
// kernel: tpu_custom_call.1
= control target key start
LH: loop header
LB: loop body
LE: loop exit
PB: predicated region body
PF: predicated region fallthrough
CT: control target
= control target key end

     0   :  { %6 = vsyncpa [#allocation3], 0  ;;  %s322_s0 = inlined_call_operand.hbm [shape: f32[16,64], index: 0, kind: input, shape index: {}]   ;;  %s323_s1 = inlined_call_operand.hbm [shape: f32[16,64], index: 1, kind: output, shape index: {}]  }
   0x1   :  { %7 = vsyncpa [#allocation4], 0  ;;  %s262_s6 = smov [#allocation2]   ;;  %s214_s10 = scalar_lea.hbm %s322_s0, 256 }
   0x2   :  { %s16_s7 = sshll.u32 %s262_s6, 4  ;;  %p215_p0 = scmp.ne.s32.totalorder %s322_s0, %s214_s10  ;;  %s17_s7 = int_to_ptr.vmem [resolvable:$true] %s16_s7 }
   0x3   :  { %p218_p1 = scmp.lt.u32.totalorder %s214_s10, %s322_s0 }
   0x5   :  { %p220_p2 = pnand %p218_p1, %p215_p0 }
   0x7   :  { %223 = shalt.err (!%p220_p2)
}
   0x8   :  { %s224_s15 = scalar_lea.vmem %s17_s7, 256  ;;  %p229_p4 = scmp.lt.s32.totalorder %s17_s7, %s17_s7 }
   0x9   :  { %p225_p3 = scmp.ne.s32.totalorder %s17_s7, %s224_s15  ;;  %p230_p5 = scmp.lt.s32.totalorder %s224_s15, %s224_s15 }
   0xb   :  { %p231_p6 = por %p230_p5, %p229_p4 }
   0xd   :  { %p232_p7 = pnand %p231_p6, %p225_p3 }
   0xf   :  { %235 = shalt.err (!%p232_p7)
}
  0x10   :  { %s263_s16 = smov 128   ;;  %s264_s17 = smov 8  }
  0x11   :  { %22 = dma.hbm_to_vmem [thread:$0]  %s322_s0, 256, %s17_s7, [#allocation3], %s263_s16, %s263_s16, %s264_s17  }
  0x12   :  { %258 = dma.done.wait [#allocation3], 256  }
  0x13   :  { %259 = vsyncadd [#allocation3], 4294967040  ;;  %v27_v0 = vld [vmem:[#allocation2] sm:$0xff]  ;;  %s265_s20 = smov 76   ;;  %s266_s21 = smov 68   ;;  %v28_v1 = vld [vmem:[#allocation2 + $0x8] sm:$0xff] }
  0x14   :  { %37 = vrot.lane.b32.xlu1 %v27_v0, %s265_s20  ;;  %31 = vrot.lane.b32.xlu0 %v27_v0, %s266_s21  ;;  %s267_s22 = smov 84   ;;  %s268_s23 = smov 92   ;;  %vm127_vm0 = vcmask 31744   ;;  %vm130_vm1 = vcmask 64512   ;;  %vm133_vm2 = vcmask 97280   ;;  %vm136_vm3 = vcmask 130048  }
  0x15   :  { %s269_s24 = smov 100   ;;  %s270_s0 = smov 108   ;;  %vm139_vm4 = vcmask 162816   ;;  %vm142_vm5 = vcmask 195584   ;;  %vm145_vm6 = vcmask 228352   ;;  %vm148_vm7 = vcmask 261120  }
  0x16   :  { %s271_s25 = smov 116   ;;  %s272_s26 = smov 124   ;;  %vm151_vm8 = vcmask 293888   ;;  %vm154_vm9 = vcmask 326656   ;;  %vm157_vm10 = vcmask 359424   ;;  %vm160_vm11 = vcmask 392192  }
  0x17   :  { %s273_s27 = smov 4   ;;  %s274_s28 = smov 12   ;;  %vm163_vm12 = vcmask 424960   ;;  %vm166_vm13 = vcmask 457728   ;;  %vm169_vm14 = vcmask 490496   ;;  %vm172_vm15 = vcmask 523264  }
  0x18   :  { %39 = vrot.lane.b32.xlu1 %v28_v1, %s265_s20  ;;  %33 = vrot.lane.b32.xlu0 %v28_v1, %s266_s21  ;;  %s275_s29 = smov 20   ;;  %s276_s30 = smov 28  }
  0x19   :  { %s277_s2 = smov 36   ;;  %s278_s3 = smov 44  }
  0x1a   :  { %s279_s4 = smov 52   ;;  %s280_s5 = smov 60  }
  0x1b   :  { %s281_s6 = smov [#allocation5]  }
  0x1c   :  { %45 = vrot.lane.b32.xlu1 %v28_v1, %s267_s22  ;;  %43 = vrot.lane.b32.xlu0 %v27_v0, %s267_s22  ;;  %s180_s7 = sshll.u32 %s281_s6, 4  ;;  %s181_s7 = int_to_ptr.vmem [resolvable:$true] %s180_s7 }
  0x1d   :  { %s236_s8 = scalar_lea.vmem %s181_s7, 256  ;;  %p241_p9 = scmp.lt.s32.totalorder %s181_s7, %s181_s7 }
  0x1e   :  { %p237_p8 = scmp.ne.s32.totalorder %s181_s7, %s236_s8  ;;  %p242_p10 = scmp.lt.s32.totalorder %s236_s8, %s236_s8 }
  0x20   :  { %51 = vrot.lane.b32.xlu1 %v28_v1, %s268_s23  ;;  %49 = vrot.lane.b32.xlu0 %v27_v0, %s268_s23  ;;  %p243_p11 = por %p242_p10, %p241_p9 }
  0x22   :  { %p244_p12 = pnand %p243_p11, %p237_p8 }
  0x24   :  { %57 = vrot.lane.b32.xlu1 %v28_v1, %s269_s24  ;;  %55 = vrot.lane.b32.xlu0 %v27_v0, %s269_s24 }
  0x28   :  { %63 = vrot.lane.b32.xlu1 %v28_v1, %s270_s0  ;;  %61 = vrot.lane.b32.xlu0 %v27_v0, %s270_s0 }
  0x2c   :  { %69 = vrot.lane.b32.xlu1 %v28_v1, %s271_s25  ;;  %67 = vrot.lane.b32.xlu0 %v27_v0, %s271_s25 }
  0x30   :  { %75 = vrot.lane.b32.xlu1 %v28_v1, %s272_s26  ;;  %73 = vrot.lane.b32.xlu0 %v27_v0, %s272_s26 }
  0x34   :  { %81 = vrot.lane.b32.xlu1 %v28_v1, %s273_s27  ;;  %79 = vrot.lane.b32.xlu0 %v27_v0, %s273_s27 }
  0x38   :  { %87 = vrot.lane.b32.xlu1 %v28_v1, %s274_s28  ;;  %85 = vrot.lane.b32.xlu0 %v27_v0, %s274_s28 }
  0x3c   :  { %93 = vrot.lane.b32.xlu1 %v28_v1, %s275_s29  ;;  %91 = vrot.lane.b32.xlu0 %v27_v0, %s275_s29 }
  0x40   :  { %99 = vrot.lane.b32.xlu1 %v28_v1, %s276_s30  ;;  %97 = vrot.lane.b32.xlu0 %v27_v0, %s276_s30 }
  0x44   :  { %105 = vrot.lane.b32.xlu1 %v28_v1, %s277_s2  ;;  %103 = vrot.lane.b32.xlu0 %v27_v0, %s277_s2 }
  0x48   :  { %111 = vrot.lane.b32.xlu1 %v28_v1, %s278_s3  ;;  %109 = vrot.lane.b32.xlu0 %v27_v0, %s278_s3 }
  0x4c   :  { %117 = vrot.lane.b32.xlu1 %v28_v1, %s279_s4  ;;  %115 = vrot.lane.b32.xlu0 %v27_v0, %s279_s4 }
  0x50   :  { %123 = vrot.lane.b32.xlu1 %v28_v1, %s280_s5  ;;  %121 = vrot.lane.b32.xlu0 %v27_v0, %s280_s5 }
  0x86   :  { %v38_v2 = vpop.permute.xlu1 %37  ;;  %v32_v3 = vpop.permute.xlu0 %31 }
  0x87   :  { %v128_v26 = vsel %vm127_vm0, %v32_v3, %v38_v2 }
  0x8a   :  { %v40_v4 = vpop.permute.xlu1 %39  ;;  %v34_v5 = vpop.permute.xlu0 %33 }
  0x8b   :  { %v129_v27 = vsel %vm127_vm0, %v34_v5, %v40_v4 }
  0x8e   :  { %v46_v6 = vpop.permute.xlu1 %45  ;;  %v44_v7 = vpop.permute.xlu0 %43 }
  0x8f   :  { %v132_v28 = vsel %vm130_vm1, %v129_v27, %v46_v6  ;;  %v131_v29 = vsel %vm130_vm1, %v128_v26, %v44_v7 }
  0x92   :  { %v52_v8 = vpop.permute.xlu1 %51  ;;  %v50_v9 = vpop.permute.xlu0 %49 }
  0x93   :  { %v135_v32 = vsel %vm133_vm2, %v132_v28, %v52_v8  ;;  %v134_v33 = vsel %vm133_vm2, %v131_v29, %v50_v9 }
  0x96   :  { %v58_v10 = vpop.permute.xlu1 %57  ;;  %v56_v11 = vpop.permute.xlu0 %55 }
  0x97   :  { %v138_v34 = vsel %vm136_vm3, %v135_v32, %v58_v10  ;;  %v137_v35 = vsel %vm136_vm3, %v134_v33, %v56_v11 }
  0x9a   :  { %v64_v12 = vpop.permute.xlu1 %63  ;;  %v62_v13 = vpop.permute.xlu0 %61 }
  0x9b   :  { %v141_v36 = vsel %vm139_vm4, %v138_v34, %v64_v12  ;;  %v140_v37 = vsel %vm139_vm4, %v137_v35, %v62_v13 }
  0x9e   :  { %v70_v14 = vpop.permute.xlu1 %69  ;;  %v68_v15 = vpop.permute.xlu0 %67 }
  0x9f   :  { %v144_v38 = vsel %vm142_vm5, %v141_v36, %v70_v14  ;;  %v143_v39 = vsel %vm142_vm5, %v140_v37, %v68_v15 }
  0xa2   :  { %v76_v16 = vpop.permute.xlu1 %75  ;;  %v74_v17 = vpop.permute.xlu0 %73 }
  0xa3   :  { %v147_v42 = vsel %vm145_vm6, %v144_v38, %v76_v16  ;;  %v146_v43 = vsel %vm145_vm6, %v143_v39, %v74_v17 }
  0xa6   :  { %v82_v18 = vpop.permute.xlu1 %81  ;;  %v80_v19 = vpop.permute.xlu0 %79 }
  0xa7   :  { %v150_v44 = vsel %vm148_vm7, %v147_v42, %v82_v18  ;;  %v149_v45 = vsel %vm148_vm7, %v146_v43, %v80_v19 }
  0xaa   :  { %v88_v20 = vpop.permute.xlu1 %87  ;;  %v86_v21 = vpop.permute.xlu0 %85 }
  0xab   :  { %v153_v46 = vsel %vm151_vm8, %v150_v44, %v88_v20  ;;  %v152_v47 = vsel %vm151_vm8, %v149_v45, %v86_v21 }
  0xae   :  { %v94_v22 = vpop.permute.xlu1 %93  ;;  %v92_v23 = vpop.permute.xlu0 %91 }
  0xaf   :  { %v156_v48 = vsel %vm154_vm9, %v153_v46, %v94_v22  ;;  %v155_v49 = vsel %vm154_vm9, %v152_v47, %v92_v23 }
  0xb2   :  { %v100_v24 = vpop.permute.xlu1 %99  ;;  %v98_v25 = vpop.permute.xlu0 %97 }
  0xb3   :  { %v159_v52 = vsel %vm157_vm10, %v156_v48, %v100_v24  ;;  %v158_v53 = vsel %vm157_vm10, %v155_v49, %v98_v25 }
  0xb6   :  { %v106_v30 = vpop.permute.xlu1 %105  ;;  %v104_v31 = vpop.permute.xlu0 %103 }
  0xb7   :  { %v162_v54 = vsel %vm160_vm11, %v159_v52, %v106_v30  ;;  %v161_v55 = vsel %vm160_vm11, %v158_v53, %v104_v31 }
  0xba   :  { %v112_v40 = vpop.permute.xlu1 %111  ;;  %v110_v41 = vpop.permute.xlu0 %109 }
  0xbb   :  { %v165_v56 = vsel %vm163_vm12, %v162_v54, %v112_v40  ;;  %v164_v57 = vsel %vm163_vm12, %v161_v55, %v110_v41 }
  0xbe   :  { %v118_v50 = vpop.permute.xlu1 %117  ;;  %v116_v51 = vpop.permute.xlu0 %115 }
  0xbf   :  { %v168_v58 = vsel %vm166_vm13, %v165_v56, %v118_v50  ;;  %v167_v59 = vsel %vm166_vm13, %v164_v57, %v116_v51 }
  0xc2   :  { %v124_v60 = vpop.permute.xlu1 %123  ;;  %v122_v61 = vpop.permute.xlu0 %121 }
  0xc3   :  { %v171_v62 = vsel %vm169_vm14, %v168_v58, %v124_v60  ;;  %v170_v63 = vsel %vm169_vm14, %v167_v59, %v122_v61 }
  0xc4   :  { %173 = vst.msk [vmem:[#allocation5] sm:$0xff] %vm172_vm15, %v170_v63  ;;  %174 = vst.msk [vmem:[#allocation5 + $0x8] sm:$0xff] %vm172_vm15, %v171_v62 }
  0xc5   :  { %247 = shalt.err (!%p244_p12)
}
  0xc6   :  { %s248_s11 = scalar_lea.hbm %s323_s1, 256 }
  0xc7   :  { %p249_p13 = scmp.ne.s32.totalorder %s323_s1, %s248_s11  ;;  %p252_p0 = scmp.lt.u32.totalorder %s248_s11, %s323_s1 }
  0xc9   :  { %p254_p1 = pnand %p252_p0, %p249_p13 }
  0xcb   :  { %257 = shalt.err (!%p254_p1)
}
  0xcc   :  { %186 = dma.vmem_to_hbm [thread:$0]  %s181_s7, 256, %s323_s1, [#allocation4], %s263_s16, %s263_s16, %s264_s17  }
  0xcd   :  { %260 = dma.done.wait [#allocation4], 256  }
  0xce   :  { %261 = vsyncadd [#allocation4], 4294967040 }
  0xcf   :  { %190 = vsyncpa [#allocation3], 1 }
  0xd0   :  { %191 = vsyncpa [#allocation4], 1 }

</bundles_post_ra>
